<compile_context>
chip_gen: v7x
topology: tpu7x:2x2x1
jax: 0.10.0
libtpu: 0.0.40
codegen_flags: <defaults>
</compile_context>

<pallas_src>
import math

import jax
import jax.numpy as jnp
from jax.experimental import pallas as pl
from jax.experimental.pallas import tpu as pltpu

_VMEM_LIMIT = 64 * 1024 * 1024


# ------------------------------ edge / node projection kernel ------------------------------
def edge_kernel(edge_ref, node_ref, we_ref, wn0_ref, oe_ref, xw0_ref):
    # edge_ref: [TN, M, E]; node_ref: [TN, D]; we_ref: [E, C]; wn0_ref: [D, C]
    es = jnp.sum(edge_ref[...], axis=1)                                   # [TN, E]
    oe_ref[...] = jnp.dot(es, we_ref[...], preferred_element_type=jnp.float32)
    xw0_ref[...] = jnp.dot(node_ref[...], wn0_ref[...],
                           preferred_element_type=jnp.float32)


# ------------------------------------ graph conv kernel ------------------------------------
def make_graph_kernel(layer_num, tn, has_rest):
    L = layer_num

    def kernel(node_ref, oe_ref, xw0_ref, adj_ref, *rest):
        if has_rest:
            wnr_ref = rest[0]
            whl_ref, lws_ref, lb_ref, o_ref, xw_sc, g_sc, acc_sc = rest[1:]
        else:
            wnr_ref = None
            whl_ref, lws_ref, lb_ref, o_ref, xw_sc, g_sc, acc_sc = rest

        h = pl.program_id(0)
        l = pl.program_id(1)
        i = pl.program_id(2)
        row0 = pl.multiple_of(i * tn, tn)

        # one-time init: zero the per-layer g cache (so zero-padded weights stay exact)
        @pl.when((h == 0) & (l == 0) & (i == 0))
        def _():
            g_sc[...] = jnp.zeros_like(g_sc)

        # per-(head, layer): full-N  xw = cache @ W_node  (block-decomposed concat)
        @pl.when(i == 0)
        def _():
            xw = xw0_ref[0]                                               # [N, ghd]
            if has_rest:
                for j in range(L - 1):                                    # zero-padded for j >= l
                    xw = xw + jnp.dot(g_sc[j], wnr_ref[0, j],
                                      preferred_element_type=jnp.float32)
            xw_sc[...] = xw

        # once per row tile: node residual through summed head weights + bias
        @pl.when((h == 0) & (l == 0))
        def _():
            acc_sc[pl.ds(row0, tn), :] = (
                jnp.dot(node_ref[...], lws_ref[...],
                        preferred_element_type=jnp.float32) + lb_ref[...])

        # GraphConv for this (head, layer, row tile)
        adj = adj_ref[0].astype(jnp.float32)                              # [tn, N], exact (0/1)
        nw = jnp.sum(adj, axis=1, keepdims=True)
        nw = nw + (nw == 0.0).astype(jnp.float32)
        inv_nw = pl.reciprocal(nw, approx=False)

        on = jnp.dot(adj, xw_sc[...], preferred_element_type=jnp.float32)  # [tn, ghd]
        g = jnp.maximum((oe_ref[0] + on) * inv_nw, 0.0)
        # TODO(synk): nn.Dropout(0.2) is identity in eval mode; implemented as identity.

        # store g into its per-layer cache slot (static unroll over tiny L axis)
        for j in range(L):
            @pl.when(l == j)
            def _(j=j):
                g_sc[j, pl.ds(row0, tn), :] = g

        # accumulate this (head, layer)'s contribution to the final Linear
        acc = acc_sc[pl.ds(row0, tn), :] + jnp.dot(g, whl_ref[0],
                                                   preferred_element_type=jnp.float32)
        acc_sc[pl.ds(row0, tn), :] = acc
        o_ref[...] = acc

    return kernel


# --------------------------------------- wrapper ---------------------------------------
def multi_graph_convolution(params, node_feat, edge_feat, adj_list, layer_num, head_num,
                            *, row_tile=None):
    N, D = node_feat.shape
    _, M, E = edge_feat.shape
    H, L = head_num, layer_num
    O = params["lin_w"].shape[1]
    hidden = O
    ghd = hidden // L
    C = ghd * L * H
    assert D == hidden, "residual add requires input_dim == output_dim"

    if row_tile is None:
        row_tile = 256
    TN = row_tile if (row_tile <= N and N % row_tile == 0) else N
    assert TN % 8 == 0 and N % TN == 0
    NT = N // TN
    f32 = jnp.float32

    # ---- wrapper-side weight packing (tiny, one-time) ----
    we_scaled = jnp.concatenate([p["w_edge"] for p in params["graphconv"]], axis=-1) * (1.0 / M)
    wn0_all = jnp.concatenate([p["w_node"][:D] for p in params["graphconv"]], axis=-1)     # [D, C]
    if L > 1:
        rest = []
        for h in range(H):
            for l in range(L):
                wn = params["graphconv"][h * L + l]["w_node"]
                blocks = []
                for j in range(L - 1):
                    if j < l:
                        blocks.append(wn[D + j * ghd: D + (j + 1) * ghd, :])
                    else:
                        blocks.append(jnp.zeros((ghd, ghd), f32))
                rest.append(jnp.stack(blocks, 0))
        wn_rest = jnp.stack(rest, 0)                                     # [H*L, L-1, ghd, ghd]
    else:
        wn_rest = None
    lin_w = params["lin_w"]                                              # [hidden*H, O]
    w_hl = lin_w.reshape(H, L, ghd, O).reshape(H * L, ghd, O)            # per (h,l) slice
    w_head_sum = lin_w.reshape(H, hidden, O).sum(0)                      # [hidden, O]
    lin_b = params["lin_b"].reshape(1, O)
    adj_bf16 = adj_list.astype(jnp.bfloat16)                             # lossless cast of 0/1

    # ---------------- pass 1: edge path + layer-0 node projection ----------------
    edge_flops = 2 * N * E * C + 2 * N * D * C + N * M * E
    edge_bytes = 4 * (N * M * E + N * D + E * C + D * C + 2 * N * C)
    oe_all, xw0_all = pl.pallas_call(
        edge_kernel,
        out_shape=(jax.ShapeDtypeStruct((N, C), f32),
                   jax.ShapeDtypeStruct((N, C), f32)),
        grid_spec=pltpu.PrefetchScalarGridSpec(
            num_scalar_prefetch=0, grid=(NT,),
            in_specs=[pl.BlockSpec((TN, M, E), lambda i: (i, 0, 0)),
                      pl.BlockSpec((TN, D), lambda i: (i, 0)),
                      pl.BlockSpec((E, C), lambda i: (0, 0)),
                      pl.BlockSpec((D, C), lambda i: (0, 0))],
            out_specs=(pl.BlockSpec((TN, C), lambda i: (i, 0)),
                       pl.BlockSpec((TN, C), lambda i: (i, 0)))),
        compiler_params=pltpu.CompilerParams(
            dimension_semantics=("parallel",), vmem_limit_bytes=_VMEM_LIMIT),
        cost_estimate=pl.CostEstimate(flops=edge_flops, transcendentals=0,
                                      bytes_accessed=edge_bytes),
    )(edge_feat, node_feat, we_scaled, wn0_all)

    oe3 = oe_all.reshape(N, H * L, ghd).transpose(1, 0, 2)               # [H*L, N, ghd]
    xw03 = xw0_all.reshape(N, H * L, ghd).transpose(1, 0, 2)             # [H*L, N, ghd]

    # ---------------- pass 2: graph conv over (head, layer, row tile) ----------------
    in_list = [node_feat, oe3, xw03, adj_bf16]
    in_specs = [
        pl.BlockSpec((TN, D), lambda h, l, i: (i, 0)),
        pl.BlockSpec((1, TN, ghd), lambda h, l, i: (h * L + l, i, 0)),
        pl.BlockSpec((1, N, ghd), lambda h, l, i: (h * L + l, 0, 0)),
        pl.BlockSpec((1, TN, N), lambda h, l, i: (h, i, 0)),
    ]
    if L > 1:
        in_list.append(wn_rest)
        in_specs.append(pl.BlockSpec((1, L - 1, ghd, ghd),
                                     lambda h, l, i: (h * L + l, 0, 0, 0)))
    in_list += [w_hl, w_head_sum, lin_b]
    in_specs += [
        pl.BlockSpec((1, ghd, O), lambda h, l, i: (h * L + l, 0, 0)),
        pl.BlockSpec((D, O), lambda h, l, i: (0, 0)),
        pl.BlockSpec((1, O), lambda h, l, i: (0, 0)),
    ]

    graph_flops = (2 * H * L * N * N * ghd + 2 * H * L * N * ghd * O + 2 * N * D * O
                   + 2 * H * L * max(L - 1, 0) * N * ghd * ghd)
    graph_bytes = (2 * H * L * N * N
                   + 4 * (H * L * N * D + 2 * H * L * N * ghd + N * O
                          + H * L * ghd * (O + max(L - 1, 0) * ghd)))

    kernel = make_graph_kernel(L, TN, has_rest=(L > 1))
    out = pl.pallas_call(
        kernel,
        out_shape=jax.ShapeDtypeStruct((N, O), f32),
        grid_spec=pltpu.PrefetchScalarGridSpec(
            num_scalar_prefetch=0, grid=(H, L, NT),
            in_specs=in_specs,
            out_specs=pl.BlockSpec((TN, O), lambda h, l, i: (i, 0)),
            scratch_shapes=[pltpu.VMEM((N, ghd), f32),       # xw for current (h, l)
                            pltpu.VMEM((L, N, ghd), f32),    # per-layer g cache
                            pltpu.VMEM((N, O), f32)]),       # output accumulator
        compiler_params=pltpu.CompilerParams(
            dimension_semantics=("arbitrary", "arbitrary", "arbitrary"),
            vmem_limit_bytes=_VMEM_LIMIT),
        cost_estimate=pl.CostEstimate(flops=graph_flops, transcendentals=H * L * N,
                                      bytes_accessed=graph_bytes),
    )(*in_list)
    return out


# ---------------------------- parameter construction ---------------------------
def xavier_uniform(key, fan_in, fan_out):
    bound = math.sqrt(6.0 / (fan_in + fan_out))
    return jax.random.uniform(key, (fan_in, fan_out), jnp.float32, -bound, bound)


def init_params(key, layer_num, head_num, input_dim, output_dim):
    hidden_dim = output_dim
    assert output_dim % layer_num == 0, "output_dim must be divisible by layer_num"
    ghd = hidden_dim // layer_num
    assert ghd * layer_num == input_dim, (
        "the residual add in the module requires input_dim == output_dim")
    params = {"graphconv": []}
    for h in range(head_num):
        for l in range(layer_num):
            key, k1, k2 = jax.random.split(key, 3)
            in_d = input_dim + ghd * l
            params["graphconv"].append({
                "w_edge": xavier_uniform(k1, input_dim, ghd),
                "w_node": xavier_uniform(k2, in_d, ghd),
            })
    key, k1, k2 = jax.random.split(key, 3)
    lin_in = hidden_dim * head_num
    bound = 1.0 / math.sqrt(lin_in)
    # Linear weight stored as [in, out] (PyTorch stores [out, in]; y = x @ W + b)
    params["lin_w"] = jax.random.uniform(k1, (lin_in, output_dim), jnp.float32, -bound, bound)
    params["lin_b"] = jax.random.uniform(k2, (1, output_dim), jnp.float32, -bound, bound)
    return params


# ------------------------- pure-JAX reference (validation) ---------------------
def reference_forward(params, node_feat, edge_feat, adj_list, layer_num, head_num):
    feat_heads = []
    for h in range(head_num):
        outputs = node_feat
        cache, outs = [outputs], []
        for l in range(layer_num):
            p = params["graphconv"][h * layer_num + l]
            oe = jnp.mean(jnp.einsum("ijk,kp->ijp", edge_feat, p["w_edge"]), axis=1)
            on = adj_list[h] @ outputs @ p["w_node"]
            nw = jnp.sum(adj_list[h], axis=1, keepdims=True)
            nw = nw + (nw == 0.0).astype(jnp.float32)
            g = jnp.maximum((oe + on) / nw, 0.0)
            cache.append(g)
            outputs = jnp.concatenate(cache, axis=-1)
            outs.append(g)
        feat_heads.append(jnp.concatenate(outs, axis=-1) + node_feat)
    feats = jnp.concatenate(feat_heads, axis=-1)
    return feats @ params["lin_w"] + params["lin_b"]


if __name__ == "__main__":
    key = jax.random.PRNGKey(0)
    N, M = 64, 8              # num_entity, edges-per-entity
    input_dim = 32
    output_dim = 32           # residual add requires input_dim == output_dim
    layer_num, head_num = 2, 2

    k1, k2, k3, kp = jax.random.split(key, 4)
    node_feat = jax.random.normal(k1, (N, input_dim), jnp.float32)
    edge_feat = jax.random.normal(k2, (N, M, input_dim), jnp.float32)
    adj_matrix_list = (jax.random.uniform(k3, (head_num, N, N)) > 0.5).astype(jnp.float32)

    params = init_params(kp, layer_num, head_num, input_dim, output_dim)

    out = multi_graph_convolution(
        params, node_feat, edge_feat, adj_matrix_list, layer_num, head_num, row_tile=16)
    out = jax.block_until_ready(out)

    ref = reference_forward(params, node_feat, edge_feat, adj_matrix_list,
                            layer_num, head_num)
    assert out.shape == (N, output_dim) and out.dtype == jnp.float32
    err = float(jnp.max(jnp.abs(out - ref)))
    assert jnp.allclose(out, ref, rtol=1e-4, atol=1e-4), err
    print("KERNEL_OK")
</pallas_src>

<mosaic_0001>
module attributes {stable_mosaic.version = 11 : i64} {
  func.func @edge_kernel(%arg0: i32, %arg1: memref<16x8x32xf32, #tpu.memory_space<vmem>>, %arg2: memref<16x32xf32, #tpu.memory_space<vmem>>, %arg3: memref<32x64xf32, #tpu.memory_space<vmem>>, %arg4: memref<32x64xf32, #tpu.memory_space<vmem>>, %arg5: memref<16x64xf32, #tpu.memory_space<vmem>>, %arg6: memref<16x64xf32, #tpu.memory_space<vmem>>) attributes {dimension_semantics = [#tpu.dimension_semantics<parallel>], iteration_bounds = array<i64: 4>, scalar_prefetch = 0 : i64, scratch_operands = 0 : i64, tpu.core_type = #tpu.core_type<tc>, window_params = [{transform_indices = @transform_0, window_bounds = array<i64: 16, 8, 32>}, {transform_indices = @transform_1, window_bounds = array<i64: 16, 32>}, {pipeline_mode = #tpu.pipeline_mode<synchronous>, transform_indices = @transform_2, window_bounds = array<i64: 32, 64>}, {pipeline_mode = #tpu.pipeline_mode<synchronous>, transform_indices = @transform_3, window_bounds = array<i64: 32, 64>}, {transform_indices = @transform_4, window_bounds = array<i64: 16, 64>}, {transform_indices = @transform_5, window_bounds = array<i64: 16, 64>}]} {
    %c0 = arith.constant 0 : index
    %c0_0 = arith.constant 0 : index
    %c0_1 = arith.constant 0 : index
    %0 = vector.load %arg1[%c0, %c0_0, %c0_1] : memref<16x8x32xf32, #tpu.memory_space<vmem>>, vector<16x8x32xf32>
    %cst = arith.constant dense<0.000000e+00> : vector<16x32xf32>
    %1 = vector.multi_reduction <add>, %0, %cst [1] : vector<16x8x32xf32> to vector<16x32xf32>
    %c0_2 = arith.constant 0 : index
    %c0_3 = arith.constant 0 : index
    %2 = vector.load %arg3[%c0_2, %c0_3] : memref<32x64xf32, #tpu.memory_space<vmem>>, vector<32x64xf32>
    %cst_4 = arith.constant dense<0.000000e+00> : vector<16x64xf32>
    %3 = tpu.matmul %1, %2, %cst_4 {dimension_numbers = #tpu.dot_dimension_numbers<[1], [0], [0], [1], [0, 0, 1, 1], [], []>} : vector<16x32xf32>, vector<32x64xf32>, vector<16x64xf32> -> vector<16x64xf32>
    %c0_5 = arith.constant 0 : index
    %c0_6 = arith.constant 0 : index
    %4 = vector.load %arg5[%c0_5, %c0_6] : memref<16x64xf32, #tpu.memory_space<vmem>>, vector<16x64xf32>
    tpu.vector_store %arg5[%c0_5, %c0_6], %3 {strides = array<i32>} : memref<16x64xf32, #tpu.memory_space<vmem>>, vector<16x64xf32>,
    %c0_7 = arith.constant 0 : index
    %c0_8 = arith.constant 0 : index
    %5 = vector.load %arg2[%c0_7, %c0_8] : memref<16x32xf32, #tpu.memory_space<vmem>>, vector<16x32xf32>
    %c0_9 = arith.constant 0 : index
    %c0_10 = arith.constant 0 : index
    %6 = vector.load %arg4[%c0_9, %c0_10] : memref<32x64xf32, #tpu.memory_space<vmem>>, vector<32x64xf32>
    %cst_11 = arith.constant dense<0.000000e+00> : vector<16x64xf32>
    %7 = tpu.matmul %5, %6, %cst_11 {dimension_numbers = #tpu.dot_dimension_numbers<[1], [0], [0], [1], [0, 0, 1, 1], [], []>} : vector<16x32xf32>, vector<32x64xf32>, vector<16x64xf32> -> vector<16x64xf32>
    %c0_12 = arith.constant 0 : index
    %c0_13 = arith.constant 0 : index
    %8 = vector.load %arg6[%c0_12, %c0_13] : memref<16x64xf32, #tpu.memory_space<vmem>>, vector<16x64xf32>
    tpu.vector_store %arg6[%c0_12, %c0_13], %7 {strides = array<i32>} : memref<16x64xf32, #tpu.memory_space<vmem>>, vector<16x64xf32>,
    return
  }
  func.func @transform_0(%arg0: i32) -> (i32, i32, i32) {
    %c0_i32 = arith.constant 0 : i32
    %c0_i32_0 = arith.constant 0 : i32
    %c0_i32_1 = arith.constant 0 : i32
    return %arg0, %c0_i32, %c0_i32_0 : i32, i32, i32
  }
  func.func @transform_1(%arg0: i32) -> (i32, i32) {
    %c0_i32 = arith.constant 0 : i32
    %c0_i32_0 = arith.constant 0 : i32
    return %arg0, %c0_i32 : i32, i32
  }
  func.func @transform_2(%arg0: i32) -> (i32, i32) {
    %c0_i32 = arith.constant 0 : i32
    %c0_i32_0 = arith.constant 0 : i32
    %c0_i32_1 = arith.constant 0 : i32
    return %c0_i32, %c0_i32_0 : i32, i32
  }
  func.func @transform_3(%arg0: i32) -> (i32, i32) {
    %c0_i32 = arith.constant 0 : i32
    %c0_i32_0 = arith.constant 0 : i32
    %c0_i32_1 = arith.constant 0 : i32
    return %c0_i32, %c0_i32_0 : i32, i32
  }
  func.func @transform_4(%arg0: i32) -> (i32, i32) {
    %c0_i32 = arith.constant 0 : i32
    %c0_i32_0 = arith.constant 0 : i32
    return %arg0, %c0_i32 : i32, i32
  }
  func.func @transform_5(%arg0: i32) -> (i32, i32) {
    %c0_i32 = arith.constant 0 : i32
    %c0_i32_0 = arith.constant 0 : i32
    return %arg0, %c0_i32 : i32, i32
  }
}

</mosaic_0001>

<bundles_post_ra>
// kernel: tpu_custom_call.1
= control target key start
LH: loop header
LB: loop body
LE: loop exit
PB: predicated region body
PF: predicated region fallthrough
CT: control target
= control target key end

     0   :  { %s1679_s0 = inlined_call_operand.hbm [shape: f32[64,8,32], index: 0, kind: input, shape index: {}]   ;;  %s1680_s1 = inlined_call_operand.hbm [shape: f32[64,32], index: 1, kind: input, shape index: {}]   ;;  %s1681_s2 = inlined_call_operand.hbm [shape: f32[32,64], index: 2, kind: input, shape index: {}]   ;;  %s1682_s3 = inlined_call_operand.hbm [shape: f32[32,64], index: 3, kind: input, shape index: {}]   ;;  %s1683_s4 = inlined_call_operand.hbm [shape: f32[64,64], index: 4, kind: output, shape index: {0}]   ;;  %s1684_s5 = inlined_call_operand.hbm [shape: f32[64,64], index: 5, kind: output, shape index: {1}]  }
   0x1   :  { %1690 = sst [smem:[#allocation19_spill]] %s1679_s0 }
   0x2   :  { %1691 = sst [smem:[#allocation20_spill]] %s1681_s2 }
   0x3   :  { %1692 = sst [smem:[#allocation21_spill]] %s1682_s3 }
   0x4   :  { %11 = vsyncpa [#allocation3], 0 }
   0x5   :  { %13 = vsyncpa [#allocation3 + $0x1], 0 }
   0x6   :  { %14 = vsyncpa [#allocation6], 0 }
   0x7   :  { %16 = vsyncpa [#allocation6 + $0x1], 0 }
   0x8   :  { %17 = vsyncpa [#allocation9], 0 }
   0x9   :  { %18 = vsyncpa [#allocation4], 0 }
   0xa   :  { %20 = vsyncpa [#allocation4 + $0x1], 0 }
   0xb   :  { %21 = vsyncpa [#allocation12], 0 }
   0xc   :  { %23 = vsyncpa [#allocation12 + $0x1], 0  ;;  %s1283_s18 = smov 0   ;;  %s1285_s19 = smov 0  }
   0xd   :  { %s1287_s20 = smov 0   ;;  %s1289_s21 = smov 0  }
   0xe LB: > { %s1304_s22 = sadd.s32 4294967295, %s1241_s21   ;;  %s850_s23 = sadd.s32 4294967294, %s1241_s21   ;;  %s1241_s21 = sphi %s1289_s21, %s1715_s21   ;;  %s1237_s20 = sphi %s1287_s20, %s1714_s20   ;;  %s1233_s19 = sphi %s1285_s19, %s1713_s19   ;;  %s1229_s18 = sphi %s1283_s18, %s1712_s18  }
   0xf   : > { %p49_p0 = scmp.ne.s32.totalorder %s1233_s19, %s1229_s18  ;;  %p1685_p1 = scmp.eq.s32.totalorder %s1304_s22, 0 }
  0x10   : > { %p147_p3 = scmp.eq.s32.totalorder %s850_s23, 3  ;;  %p851_p5 = scmp.ge.s32.totalorder %s1241_s21, 1 }
  0x11   : > { %p1313_p4 = por %p1685_p1, %p49_p0  ;;  %p180_p7 = scmp.lt.s32.totalorder %s1241_s21, 5 }
  0x12   : > { %p1318_p6 = por %p147_p3, %p49_p0  ;;  %s1243_s27 = smov [#allocation7]  }
  0x13   : > { %s1693_s24 = scalar_select %p1313_p4, 1, 0 }
  0x14   : > { %s1694_s25 = scalar_select %p1318_p6, 1, 0 }
  0x15   : > { %p1323_p8 = pnand %p851_p5, %p180_p7  ;;  %s192_s28 = sshll.u32 %s1243_s27, 4  ;;  %s193_s28 = int_to_ptr.vmem [resolvable:$true] %s192_s28 }
  0x16   : > { %s1244_s30 = smov [#allocation8]   ;;  %s1697_s2 = sld [smem:[#allocation20_spill]] }
  0x17   : > { %s1695_s26 = scalar_select %p1323_p8, 1, 0 }
  0x18   : > { %p950_p9 = pneg %p1323_p8  ;;  %s205_s6 = sshll.u32 %s1244_s30, 4  ;;  %s1335_s6 = int_to_ptr.vmem [resolvable:$true] %s205_s6 }
  0x1a   : > { %p1331_p10 = pnand %p950_p9, %p1685_p1 }
  0x1c   : > { %s1015_s9 = scalar_lea.hbm %s1697_s2, 512  ;;  %p1017_p12 = pneg %p1331_p10 }
  0x1d   : > { %p1016_p11 = scmp.ne.s32.totalorder %s1697_s2, %s1015_s9  ;;  %p1022_p3 = scmp.lt.u32.totalorder %s1015_s9, %s1697_s2 }
  0x1f   : > { %p1018_p13 = pnand %p1017_p12, %p1016_p11 }
  0x21   : > { %p1019_p0 = pneg %p1018_p13 }
  0x23   : > { %p1024_p5 = pnand %p1022_p3, %p1019_p0 }
  0x25   : > { %1027 = shalt.err (!%p1024_p5)
}
  0x26   : > { %s1028_s14 = scalar_lea.vmem %s193_s28, 512  ;;  %p1036_p2 = scmp.lt.s32.totalorder %s193_s28, %s193_s28 }
  0x27   : > { %p1029_p7 = scmp.ne.s32.totalorder %s193_s28, %s1028_s14  ;;  %p1037_p6 = scmp.lt.s32.totalorder %s1028_s14, %s1028_s14 }
  0x29   : > { %p1031_p9 = pnand %p1029_p7, %p1017_p12  ;;  %p1038_p4 = por %p1037_p6, %p1036_p2 }
  0x2b   : > { %p1032_p1 = pneg %p1031_p9 }
  0x2d   : > { %p1039_p8 = pnand %p1038_p4, %p1032_p1 }
  0x2f   : > { %1042 = shalt.err (!%p1039_p8)
}
  0x30   : > { %s1688_s15 = smov 128   ;;  %s1246_s16 = smov 8  }
  0x31   : > { %953 = dma.hbm_to_vmem [thread:$0]  (!%p1331_p10), %s1697_s2, 512, %s193_s28, [#allocation6], %s1688_s15, %s1688_s15, %s1246_s16  }
  0x32   : > { %s1698_s3 = sld [smem:[#allocation21_spill]] }
  0x38   : > { %s1043_s7 = scalar_lea.hbm %s1698_s3, 512 }
  0x39   : > { %p1044_p1 = scmp.ne.s32.totalorder %s1698_s3, %s1043_s7  ;;  %p1050_p6 = scmp.lt.u32.totalorder %s1043_s7, %s1698_s3 }
  0x3b   : > { %p1046_p2 = pnand %p1044_p1, %p1017_p12 }
  0x3d   : > { %p1047_p4 = pneg %p1046_p2 }
  0x3f   : > { %p1052_p8 = pnand %p1050_p6, %p1047_p4 }
  0x41   : > { %1055 = shalt.err (!%p1052_p8)
}
  0x42   : > { %s1056_s28 = scalar_lea.vmem %s1335_s6, 512  ;;  %p1064_p3 = scmp.lt.s32.totalorder %s1335_s6, %s1335_s6 }
  0x43   : > { %p1057_p11 = scmp.ne.s32.totalorder %s1335_s6, %s1056_s28  ;;  %p1065_p5 = scmp.lt.s32.totalorder %s1056_s28, %s1056_s28 }
  0x45   : > { %p1059_p13 = pnand %p1057_p11, %p1017_p12  ;;  %p1066_p7 = por %p1065_p5, %p1064_p3 }
  0x47   : > { %p1060_p0 = pneg %p1059_p13 }
  0x49   : > { %p1067_p9 = pnand %p1066_p7, %p1060_p0 }
  0x4b   : > { %1070 = shalt.err (!%p1067_p9)
}
  0x4c   : > { %956 = dma.hbm_to_vmem [thread:$0]  (!%p1331_p10), %s1698_s3, 512, %s1335_s6, [#allocation9], %s1688_s15, %s1688_s15, %s1246_s16  }
  0x4d   : > { %s1391_s29 = sadd.s32 1, %s1241_s21   ;;  %s36_s14 = sadd.s32 1, %s1237_s20 }
  0x4e   : > { %s33_s17 = ssub.s32 %s1241_s21, %s1391_s29  ;;  %p43_p12 = scmp.ne.s32.totalorder %s1237_s20, %s1233_s19 }
  0x4f   : > { %p34_p1 = scmp.eq.s32.totalorder %s33_s17, 0  ;;  %p44_p2 = scmp.eq.s32.totalorder %s1241_s21, 0 }
  0x50   : > { %p1699_p4 = scmp.eq.s32.totalorder %s1304_s22, 3  ;;  %p973_p8 = scmp.lt.s32.totalorder %s1241_s21, 4 }
  0x51   : > { %s1407_s27 = scalar_select %p34_p1, %s1237_s20, %s36_s14  }
  0x52   : > { %p1401_p6 = por %p1699_p4, %p43_p12  ;;  %p45_p11 = por %p44_p2, %p43_p12 }
  0x53   : > { %s1410_s30 = sand.u32 1, %s1237_s20   ;;  %s880_s7 = sshll.u32 %s1241_s21, 11 }
  0x54   : > { %s855_s6 = sshll.u32 %s1410_s30, 7  ;;  %s1701_s0 = sld [smem:[#allocation19_spill]] }
  0x55   : > { %s223_s11 = scalar_lea.vmem [#allocation2], %s855_s6  ;;  %p1421_p10 = pnand %p973_p8, %p45_p11 }
  0x56   : > { %s230_s28 = sshll.u32 %s223_s11, 4  ;;  %s858_s14 = sshll.u32 %s1410_s30, 4  ;;  %s1419_s28 = int_to_ptr.vmem [resolvable:$true] %s230_s28 }
  0x57   : > { %s220_s17 = scalar_lea.sflag [#allocation3], %s1410_s30  ;;  %p1073_p0 = pneg %p1421_p10 }
  0x5a   : > { %s1417_s10 = scalar_lea.hbm %s1701_s0, %s880_s7  ;;  %s1076_s9 = scalar_lea.hbm %s1701_s0, 8192 }
  0x5b   : > { %s1071_s8 = scalar_lea.hbm %s1417_s10, 2048  ;;  %p1077_p7 = scmp.lt.u32.totalorder %s1417_s10, %s1701_s0 }
  0x5c   : > { %p1072_p13 = scmp.ne.s32.totalorder %s1417_s10, %s1071_s8  ;;  %p1078_p9 = scmp.lt.u32.totalorder %s1076_s9, %s1071_s8 }
  0x5d   : > { %p1080_p1 = scmp.lt.u32.totalorder %s1071_s8, %s1417_s10 }
  0x5e   : > { %p1074_p3 = pnand %p1073_p0, %p1072_p13  ;;  %p1079_p12 = por %p1078_p9, %p1077_p7 }
  0x60   : > { %p1075_p5 = pneg %p1074_p3  ;;  %p1081_p2 = por %p1080_p1, %p1079_p12 }
  0x62   : > { %p1082_p4 = pnand %p1081_p2, %p1075_p5 }
  0x64   : > { %1085 = shalt.err (!%p1082_p4)
}
  0x65   : > { %s1086_s13 = scalar_lea.vmem %s1419_s28, 2048  ;;  %s1247_s6 = smov [#allocation2]  }
  0x66   : > { %p1087_p8 = scmp.ne.s32.totalorder %s1419_s28, %s1086_s13  ;;  %s1091_s7 = sshll.u32 %s1247_s6, 4  ;;  %s1092_s7 = int_to_ptr.vmem [resolvable:$false] %s1091_s7 }
  0x67   : > { %s1093_s15 = scalar_lea.vmem %s1092_s7, 4096  ;;  %p1094_p3 = scmp.lt.s32.totalorder %s1419_s28, %s1092_s7 }
  0x68   : > { %p1089_p11 = pnand %p1087_p8, %p1073_p0  ;;  %p1095_p7 = scmp.lt.s32.totalorder %s1093_s15, %s1086_s13 }
  0x6a   : > { %p1090_p13 = pneg %p1089_p11  ;;  %p1096_p9 = por %p1095_p7, %p1094_p3 }
  0x6c   : > { %p1097_p12 = pnand %p1096_p9, %p1090_p13 }
  0x6e   : > { %1100 = shalt.err (!%p1097_p12)
}
  0x6f   : > { %s1703_s8 = smov 128   ;;  %s881_s9 = sshll.u32 %s1241_s21, 8 }
  0x70   : > { %960 = dma.hbm_to_vmem [thread:$0]  (!%p1421_p10), %s1417_s10, 2048, %s1419_s28, %s220_s17, %s1703_s8, %s1703_s8, %s1246_s16  }
  0x71   : > { %s1462_s6 = scalar_lea.hbm %s1680_s1, %s881_s9  ;;  %s244_s7 = scalar_lea.vmem [#allocation5], %s858_s14 }
  0x72   : > { %s251_s15 = sshll.u32 %s244_s7, 4  ;;  %s1704_s0 = sand.u32 1, %s1241_s21   ;;  %s1466_s15 = int_to_ptr.vmem [resolvable:$true] %s251_s15 }
  0x73   : > { %s1470_s2 = scalar_lea.sflag [#allocation6], %s1704_s0  ;;  %s1101_s3 = scalar_lea.hbm %s1462_s6, 256 }
  0x74   : > { %p1102_p5 = scmp.ne.s32.totalorder %s1462_s6, %s1101_s3  ;;  %s1106_s30 = scalar_lea.hbm %s1680_s1, 1024 }
  0x75   : > { %p1107_p4 = scmp.lt.u32.totalorder %s1462_s6, %s1680_s1  ;;  %p1108_p8 = scmp.lt.u32.totalorder %s1106_s30, %s1101_s3 }
  0x76   : > { %p1104_p1 = pnand %p1102_p5, %p1073_p0  ;;  %p1110_p13 = scmp.lt.u32.totalorder %s1101_s3, %s1462_s6 }
  0x77   : > { %p1109_p11 = por %p1108_p8, %p1107_p4 }
  0x78   : > { %p1105_p2 = pneg %p1104_p1 }
  0x79   : > { %p1111_p3 = por %p1110_p13, %p1109_p11 }
  0x7b   : > { %p1112_p7 = pnand %p1111_p3, %p1105_p2 }
  0x7d   : > { %1115 = shalt.err (!%p1112_p7)
}
  0x7e   : > { %s1116_s0 = scalar_lea.vmem %s1466_s15, 256  ;;  %s1248_s14 = smov [#allocation5]  }
  0x7f   : > { %p1117_p9 = scmp.ne.s32.totalorder %s1466_s15, %s1116_s0  ;;  %s1121_s11 = sshll.u32 %s1248_s14, 4  ;;  %s1122_s11 = int_to_ptr.vmem [resolvable:$false] %s1121_s11 }
  0x80   : > { %s1123_s13 = scalar_lea.vmem %s1122_s11, 512  ;;  %p1124_p1 = scmp.lt.s32.totalorder %s1466_s15, %s1122_s11 }
  0x81   : > { %p1119_p12 = pnand %p1117_p9, %p1073_p0  ;;  %p1125_p4 = scmp.lt.s32.totalorder %s1123_s13, %s1116_s0 }
  0x83   : > { %p1120_p5 = pneg %p1119_p12  ;;  %p1126_p8 = por %p1125_p4, %p1124_p1 }
  0x85   : > { %p1127_p11 = pnand %p1126_p8, %p1120_p5 }
  0x87   : > { %1130 = shalt.err (!%p1127_p11)
}
  0x88   : > { %963 = dma.hbm_to_vmem [thread:$0]  (!%p1421_p10), %s1462_s6, 256, %s1466_s15, %s1470_s2, %s1703_s8, %s1703_s8, %s1246_s16  }
  0x89   : > { %p1705_p0 = scmp.ne.s32.totalorder %s1695_s26, 0 }
  0x8a   : > { %s1502_s3 = sand.u32 (!%p1705_p0), 1, %s1233_s19   ;;  %p1706_p2 = scmp.ne.s32.totalorder (!%p1705_p0), %s1693_s24, 0 }
  0x8b   : > { %263 = sbr.rel (%p1705_p0) target bundleno = 424 (0x1a8), region = 36  ;;  %s862_s7 = sshll.u32 (!%p1705_p0), %s1502_s3, 7 }
  0x8c   : > { %s266_s10 = scalar_lea.sflag (!%p1705_p0), [#allocation3], %s1502_s3  ;;  %s1506_s28 = scalar_lea.vmem (!%p1705_p0), [#allocation2], %s862_s7 }
  0x92   : > { %1204 = dma.done.wait (%p1706_p2), %s266_s10, 2048  }
  0x93   : > { %1206 = vsyncadd (%p1706_p2), %s266_s10, 4294965248  ;;  %s274_s2 = sand.u32 1, %s1304_s22   ;;  %s1514_s26 = sshll.u32 %s1502_s3, 4 }
  0x94   : > { %s275_s16 = scalar_lea.sflag [#allocation6], %s274_s2  ;;  %s278_s12 = scalar_lea.vmem [#allocation5], %s1514_s26 }
  0x95   : > { %1208 = dma.done.wait (%p1706_p2), %s275_s16, 256  }
  0x96   : > { %1210 = vsyncadd (%p1706_p2), %s275_s16, 4294967040  ;;  %p1707_p10 = scmp.eq.s32.totalorder %s1304_s22, 0 }
  0x98   : > { %1212 = dma.done.wait (%p1707_p10), [#allocation6], 512   ;;  %p1708_p13 = pmov %p1707_p10 }
  0x99   : > { %p1709_p3 = pmov %p1707_p10 }
  0x9a   : > { %1214 = vsyncadd (%p1708_p13), [#allocation6], 4294966784 }
  0x9b   : > { %1216 = dma.done.wait (%p1709_p3), [#allocation9], 512   ;;  %p1710_p7 = pmov %p1709_p3 }
  0x9c   : > { %v581_v0 = vld [vmem:[#allocation8] sm:$0xff]  ;;  %v582_v1 = vld [vmem:[#allocation8 + $0x8] sm:$0xff]  ;;  %v583_v5 = vld [vmem:[#allocation8 + $0x10] sm:$0xff]  ;;  %vm343_vm0 = vcmask 261120   ;;  %vm476_vm1 = vcmask 1041409   ;;  %vm478_vm2 = vcmask 1042434  }
  0x9d   : > { %1218 = vsyncadd (%p1710_p7), [#allocation9], 4294966784  ;;  %v456_v2 = vld [vmem:[#allocation7] sm:$0xff]  ;;  %v926_v3 = vpack.c.bf16 %v582_v1, %v581_v0  ;;  %v457_v4 = vld [vmem:[#allocation7 + $0x8] sm:$0xff]  ;;  %vm480_vm3 = vcmask 1043459   ;;  %vm482_vm4 = vcmask 1044484  }
  0x9e   : > { %v584_v6 = vld [vmem:[#allocation8 + $0x18] sm:$0xff]  ;;  %v918_v7 = vpack.c.bf16 %v457_v4, %v456_v2  ;;  %v458_v9 = vld [vmem:[#allocation7 + $0x10] sm:$0xff]  ;;  %v327_v13 = vld [vmem:[%s1506_s28] sm:$0xff]  ;;  %vm484_vm5 = vcmask 1045509   ;;  %vm486_vm6 = vcmask 1046534   ;;  %vm488_vm7 = vcmask 1047559  }
  0x9f   : > { %v930_v8 = vpack.c.bf16 %v584_v6, %v583_v5  ;;  %v459_v10 = vld [vmem:[#allocation7 + $0x18] sm:$0xff]  ;;  %v579_v11 = vld [vmem:[%s278_s12] sm:$0xff]  ;;  %927 = vmatprep.subr.bf16.mxu1 %v926_v3  ;;  %v328_v14 = vld [vmem:[%s1506_s28 + $0x8] sm:$0xff]  ;;  %v344_v19 = vsel %vm343_vm0, %v327_v13, 0.0  ;;  %s322_s24 = scalar_lea.vmem [#allocation11], %s1514_s26  ;;  %s882_s6 = sshll.u32 %s1304_s22, 8 }
  0xa0   : > { %v922_v12 = vpack.c.bf16 %v459_v10, %v458_v9  ;;  %915 = vmatprep.mubr.msk.f32.mxu1 %vm343_vm0, %v579_v11  ;;  %v329_v15 = vld [vmem:[%s1506_s28 + $0x10] sm:$0xff]  ;;  %919 = vmatprep.subr.bf16.mxu0 %v918_v7  ;;  %v330_v16 = vld [vmem:[%s1506_s28 + $0x18] sm:$0xff]  ;;  %v331_v17 = vld [vmem:[%s1506_s28 + $0x20] sm:$0xff]  ;;  %v351_v20 = vsel %vm343_vm0, %v328_v14, 0.0  ;;  %v345_v24 = vrot.slane %v344_v19, 4  ;;  %s703_s8 = sshll.u32 %s322_s24, 4  ;;  %s1592_s17 = scalar_lea.hbm %s1684_s5, %s882_s6  ;;  %s1585_s8 = int_to_ptr.vmem [resolvable:$true] %s703_s8 }
  0xa1   : > { %929 = vmatpush3.bf16.msra.mxu1 %v926_v3  ;;  %v332_v18 = vld [vmem:[%s1506_s28 + $0x28] sm:$0xff]  ;;  %v358_v21 = vsel %vm343_vm0, %v329_v15, 0.0  ;;  %921 = vmatpush3.bf16.msra.mxu0 %v918_v7  ;;  %v333_v22 = vld [vmem:[%s1506_s28 + $0x30] sm:$0xff]  ;;  %v334_v23 = vld [vmem:[%s1506_s28 + $0x38] sm:$0xff]  ;;  %v352_v25 = vrot.slane %v351_v20, 4  ;;  %v365_v27 = vsel %vm343_vm0, %v330_v16, 0.0 }
  0xa2   : > { %931 = vmatprep.subr.bf16.mxu1 %v930_v8  ;;  %v359_v26 = vrot.slane %v358_v21, 4  ;;  %923 = vmatprep.subr.bf16.mxu0 %v922_v12  ;;  %v366_v28 = vrot.slane %v365_v27, 4  ;;  %v372_v29 = vsel %vm343_vm0, %v331_v17, 0.0  ;;  %v379_v30 = vsel %vm343_vm0, %v332_v18, 0.0  ;;  %v580_v40 = vld [vmem:[%s278_s12 + $0x8] sm:$0xff]  ;;  %v335_v1 = vld [vmem:[%s1506_s28 + $0x40] sm:$0xff] }
  0xa3   : > { %v386_v31 = vsel %vm343_vm0, %v333_v22, 0.0  ;;  %v346_v32 = vadd.f32 %v345_v24, %v344_v19  ;;  %v353_v33 = vadd.f32 %v352_v25, %v351_v20  ;;  %v373_v35 = vrot.slane %v372_v29, 4  ;;  %v336_v2 = vld [vmem:[%s1506_s28 + $0x48] sm:$0xff]  ;;  %v337_v11 = vld [vmem:[%s1506_s28 + $0x50] sm:$0xff]  ;;  %v338_v14 = vld [vmem:[%s1506_s28 + $0x58] sm:$0xff]  ;;  %s674_s9 = scalar_lea.sflag [#allocation12], %s1502_s3 }
  0xa4   : > { %v360_v34 = vadd.f32 %v359_v26, %v358_v21  ;;  %v367_v36 = vadd.f32 %v366_v28, %v365_v27  ;;  %v380_v37 = vrot.slane %v379_v30, 4  ;;  %v387_v38 = vrot.slane %v386_v31, 4  ;;  %v339_v22 = vld [vmem:[%s1506_s28 + $0x60] sm:$0xff]  ;;  %s1131_s0 = scalar_lea.vmem %s1585_s8, 256  ;;  %s1249_s14 = smov [#allocation11]  }
  0xa5   : > { %933 = vmatpush3.bf16.msra.mxu1 %v930_v8  ;;  %v393_v39 = vsel %vm343_vm0, %v334_v23, 0.0  ;;  %925 = vmatpush3.bf16.msra.mxu0 %v922_v12  ;;  %v347_v41 = vrot.slane %v346_v32, 2  ;;  %v354_v42 = vrot.slane %v353_v33, 2  ;;  %v374_v44 = vadd.f32 %v373_v35, %v372_v29  ;;  %v340_v23 = vld [vmem:[%s1506_s28 + $0x68] sm:$0xff]  ;;  %p1132_p9 = scmp.ne.s32.totalorder %s1585_s8, %s1131_s0  ;;  %s1135_s11 = sshll.u32 %s1249_s14, 4  ;;  %s1136_s11 = int_to_ptr.vmem [resolvable:$false] %s1135_s11 }
  0xa6   : > { %v361_v43 = vrot.slane %v360_v34, 2  ;;  %v368_v45 = vrot.slane %v367_v36, 2  ;;  %v381_v46 = vadd.f32 %v380_v37, %v379_v30  ;;  %v388_v47 = vadd.f32 %v387_v38, %v386_v31  ;;  %s1137_s13 = scalar_lea.vmem %s1136_s11, 512  ;;  %p1138_p1 = scmp.lt.s32.totalorder %s1585_s8, %s1136_s11 }
  0xa7   : > { %v394_v48 = vrot.slane %v393_v39, 4  ;;  %v348_v49 = vadd.f32 %v347_v41, %v346_v32  ;;  %v355_v50 = vadd.f32 %v354_v42, %v353_v33  ;;  %v375_v52 = vrot.slane %v374_v44, 2  ;;  %v341_v32 = vld [vmem:[%s1506_s28 + $0x70] sm:$0xff]  ;;  %v342_v41 = vld [vmem:[%s1506_s28 + $0x78] sm:$0xff]  ;;  %p1133_p12 = pnand %p1132_p9, %p1401_p6  ;;  %p1139_p4 = scmp.lt.s32.totalorder %s1137_s13, %s1131_s0 }
  0xa8   : > { %v362_v51 = vadd.f32 %v361_v43, %v360_v34  ;;  %916 = vmatmul.mubr.msk.f32.vlgmr.msra.gmra.mrb[0].mxu1 %vm343_vm0, %v580_v40  ;;  %v369_v53 = vadd.f32 %v368_v45, %v367_v36  ;;  %v382_v54 = vrot.slane %v381_v46, 2  ;;  %v389_v55 = vrot.slane %v388_v47, 2 }
  0xa9   : > { %v395_v56 = vadd.f32 %v394_v48, %v393_v39  ;;  %v349_v57 = vrot.slane %v348_v49, 1  ;;  %v356_v58 = vrot.slane %v355_v50, 1  ;;  %v376_v60 = vadd.f32 %v375_v52, %v374_v44  ;;  %p1134_p5 = pneg %p1133_p12  ;;  %p1140_p8 = por %p1139_p4, %p1138_p1 }
  0xaa   : > { %v363_v59 = vrot.slane %v362_v51, 1  ;;  %v370_v61 = vrot.slane %v369_v53, 1  ;;  %v383_v62 = vadd.f32 %v382_v54, %v381_v46  ;;  %v390_v63 = vadd.f32 %v389_v55, %v388_v47 }
  0xab   : > { %v396_v0 = vrot.slane %v395_v56, 2  ;;  %v350_v3 = vadd.f32 %v349_v57, %v348_v49  ;;  %v357_v4 = vadd.f32 %v356_v58, %v355_v50  ;;  %v377_v6 = vrot.slane %v376_v60, 1  ;;  %p1141_p11 = pnand %p1140_p8, %p1134_p5 }
  0xac   : > { %v364_v5 = vadd.f32 %v363_v59, %v362_v51  ;;  %v371_v7 = vadd.f32 %v370_v61, %v369_v53  ;;  %v384_v8 = vrot.slane %v383_v62, 1  ;;  %v391_v9 = vrot.slane %v390_v63, 1 }
  0xad   : > { %v397_v10 = vadd.f32 %v396_v0, %v395_v56  ;;  %v378_v12 = vadd.f32 %v377_v6, %v376_v60  ;;  %v477_v13 = vsel %vm476_vm1, %v357_v4, %v350_v3  ;;  %v400_v15 = vsel %vm343_vm0, %v335_v1, 0.0 }
  0xae   : > { %v407_v16 = vsel %vm343_vm0, %v336_v2, 0.0  ;;  %v385_v17 = vadd.f32 %v384_v8, %v383_v62  ;;  %v392_v18 = vadd.f32 %v391_v9, %v390_v63  ;;  %v479_v20 = vsel %vm478_vm2, %v364_v5, %v477_v13 }
  0xaf   : > { %v398_v19 = vrot.slane %v397_v10, 1  ;;  %v481_v21 = vsel %vm480_vm3, %v371_v7, %v479_v20  ;;  %v401_v24 = vrot.slane %v400_v15, 4  ;;  %v408_v25 = vrot.slane %v407_v16, 4 }
  0xb0   : > { %v414_v26 = vsel %vm343_vm0, %v337_v11, 0.0  ;;  %v483_v28 = vsel %vm482_vm4, %v378_v12, %v481_v21  ;;  %v421_v30 = vsel %vm343_vm0, %v338_v14, 0.0  ;;  %v428_v38 = vsel %vm343_vm0, %v339_v22, 0.0 }
  0xb1   : > { %v399_v27 = vadd.f32 %v398_v19, %v397_v10  ;;  %v415_v29 = vrot.slane %v414_v26, 4  ;;  %v485_v31 = vsel %vm484_vm5, %v385_v17, %v483_v28  ;;  %v402_v33 = vadd.f32 %v401_v24, %v400_v15 }
  0xb2   : > { %v409_v34 = vadd.f32 %v408_v25, %v407_v16  ;;  %v422_v35 = vrot.slane %v421_v30, 4  ;;  %v487_v36 = vsel %vm486_vm6, %v392_v18, %v485_v31  ;;  %v435_v39 = vsel %vm343_vm0, %v340_v23, 0.0 }
  0xb3   : > { %v416_v37 = vadd.f32 %v415_v29, %v414_v26  ;;  %v489_v40 = vsel %vm488_vm7, %v399_v27, %v487_v36  ;;  %v403_v42 = vrot.slane %v402_v33, 2  ;;  %v429_v46 = vrot.slane %v428_v38, 4 }
  0xb4   : > { %v410_v43 = vrot.slane %v409_v34, 2  ;;  %v423_v44 = vadd.f32 %v422_v35, %v421_v30  ;;  %904 = vmatprep.mubr.msk.f32.mxu0 %vm343_vm0, %v489_v40  ;;  %v436_v47 = vrot.slane %v435_v39, 4  ;;  %v442_v48 = vsel %vm343_vm0, %v341_v32, 0.0 }
  0xb5   : > { %v417_v45 = vrot.slane %v416_v37, 2  ;;  %v404_v49 = vadd.f32 %v403_v42, %v402_v33  ;;  %v443_v52 = vrot.slane %v442_v48, 4  ;;  %v430_v54 = vadd.f32 %v429_v46, %v428_v38 }
  0xb6   : > { %v411_v50 = vadd.f32 %v410_v43, %v409_v34  ;;  %v424_v51 = vrot.slane %v423_v44, 2  ;;  %v437_v55 = vadd.f32 %v436_v47, %v435_v39  ;;  %v449_v56 = vsel %vm343_vm0, %v342_v41, 0.0 }
  0xb7   : > { %v418_v53 = vadd.f32 %v417_v45, %v416_v37  ;;  %v405_v57 = vrot.slane %v404_v49, 1  ;;  %v444_v60 = vadd.f32 %v443_v52, %v442_v48  ;;  %v431_v62 = vrot.slane %v430_v54, 2 }
  0xb8   : > { %v412_v58 = vrot.slane %v411_v50, 1  ;;  %v425_v59 = vadd.f32 %v424_v51, %v423_v44  ;;  %v438_v63 = vrot.slane %v437_v55, 2  ;;  %v450_v0 = vrot.slane %v449_v56, 4 }
  0xb9   : > { %v419_v61 = vrot.slane %v418_v53, 1  ;;  %v406_v1 = vadd.f32 %v405_v57, %v404_v49  ;;  %v445_v4 = vrot.slane %v444_v60, 2  ;;  %v432_v6 = vadd.f32 %v431_v62, %v430_v54 }
  0xba   : > { %v413_v2 = vadd.f32 %v412_v58, %v411_v50  ;;  %v426_v3 = vrot.slane %v425_v59, 1  ;;  %v439_v7 = vadd.f32 %v438_v63, %v437_v55  ;;  %v451_v8 = vadd.f32 %v450_v0, %v449_v56 }
  0xbb   : > { %v420_v5 = vadd.f32 %v419_v61, %v418_v53  ;;  %v446_v10 = vadd.f32 %v445_v4, %v444_v60  ;;  %v433_v12 = vrot.slane %v432_v6, 1  ;;  %vm576_vm8 = vcmask 523264  }
  0xbc   : > { %v427_v9 = vadd.f32 %v426_v3, %v425_v59  ;;  %v490_v11 = vsel %vm476_vm1, %v413_v2, %v406_v1  ;;  %v440_v13 = vrot.slane %v439_v7, 1  ;;  %v452_v14 = vrot.slane %v451_v8, 2 }
  0xbd   : > { %v491_v15 = vsel %vm478_vm2, %v420_v5, %v490_v11  ;;  %v447_v16 = vrot.slane %v446_v10, 1  ;;  %v434_v18 = vadd.f32 %v433_v12, %v432_v6 }
  0xbe   : > { %v492_v17 = vsel %vm480_vm3, %v427_v9, %v491_v15  ;;  %v441_v19 = vadd.f32 %v440_v13, %v439_v7  ;;  %v453_v20 = vadd.f32 %v452_v14, %v451_v8 }
  0xbf   : > { %v448_v21 = vadd.f32 %v447_v16, %v446_v10  ;;  %v493_v23 = vsel %vm482_vm4, %v434_v18, %v492_v17 }
  0xc0   : > { %v454_v22 = vrot.slane %v453_v20, 1  ;;  %v494_v24 = vsel %vm484_vm5, %v441_v19, %v493_v23 }
  0xc1   : > { %v495_v26 = vsel %vm486_vm6, %v448_v21, %v494_v24 }
  0xc2   : > { %v455_v25 = vadd.f32 %v454_v22, %v453_v20 }
  0xc4   : > { %v496_v27 = vsel %vm488_vm7, %v455_v25, %v495_v26 }
  0xc5   : > { %905 = vmatmul.mubr.msk.f32.vlgmr.msra.gmra.mrb[0].mxu0 %vm343_vm0, %v496_v27 }
 0x17b   : > { %v917_v28 = vpop.f32.mrb[0].mxu1 }
 0x17c   : > { %667 = vst.msk [vmem:[%s322_s24 + $0x8] sm:$0xff] %vm576_vm8, %v917_v28  ;;  %v657_v29 = vpop.f32.mrb[1].mxu1 }
 0x17d   : > { %666 = vst.msk [vmem:[%s322_s24] sm:$0xff] %vm576_vm8, %v657_v29 }
 0x17e   : > { %1144 = shalt.err (!%p1141_p11)
}
 0x17f   : > { %s1145_s7 = scalar_lea.hbm %s1592_s17, 256  ;;  %s1149_s2 = scalar_lea.hbm %s1684_s5, 1024 }
 0x180   : > { %p1146_p0 = scmp.ne.s32.totalorder %s1592_s17, %s1145_s7  ;;  %p1150_p13 = scmp.lt.u32.totalorder %s1592_s17, %s1684_s5 }
 0x181   : > { %p1151_p3 = scmp.lt.u32.totalorder %s1149_s2, %s1145_s7  ;;  %p1153_p9 = scmp.lt.u32.totalorder %s1145_s7, %s1592_s17 }
 0x182   : > { %p1147_p2 = pnand %p1146_p0, %p1401_p6 }
 0x183   : > { %p1152_p7 = por %p1151_p3, %p1150_p13 }
 0x184   : > { %p1148_p10 = pneg %p1147_p2 }
 0x185   : > { %p1154_p12 = por %p1153_p9, %p1152_p7 }
 0x187   : > { %p1155_p5 = pnand %p1154_p12, %p1148_p10 }
 0x189   : > { %1158 = shalt.err (!%p1155_p5)
}
 0x18a   : > { %s1250_s24 = smov 128   ;;  %s1251_s15 = smov 8  }
 0x18b   : > { %947 = dma.vmem_to_hbm [thread:$0]  (%p1401_p6), %s1585_s8, 256, %s1592_s17, %s674_s9, %s1250_s24, %s1250_s24, %s1251_s15  }
 0x18c   : > { %s315_s30 = scalar_lea.vmem [#allocation10], %s1514_s26  ;;  %s1631_s13 = scalar_lea.hbm %s1683_s4, %s882_s6 }
 0x18d   : > { %s687_s0 = sshll.u32 %s315_s30, 4  ;;  %s669_s8 = scalar_lea.sflag [#allocation4], %s1502_s3  ;;  %s1624_s0 = int_to_ptr.vmem [resolvable:$true] %s687_s0 }
 0x18e   : > { %s1159_s26 = scalar_lea.vmem %s1624_s0, 256  ;;  %s1252_s17 = smov [#allocation10]  }
 0x18f   : > { %p1160_p1 = scmp.ne.s32.totalorder %s1624_s0, %s1159_s26  ;;  %s1163_s9 = sshll.u32 %s1252_s17, 4  ;;  %s1164_s9 = int_to_ptr.vmem [resolvable:$false] %s1163_s9 }
 0x190   : > { %s1165_s22 = scalar_lea.vmem %s1164_s9, 512  ;;  %p1166_p11 = scmp.lt.s32.totalorder %s1624_s0, %s1164_s9 }
 0x191   : > { %p1161_p4 = pnand %p1160_p1, %p1401_p6  ;;  %p1167_p0 = scmp.lt.s32.totalorder %s1165_s22, %s1159_s26 }
 0x193   : > { %p1162_p8 = pneg %p1161_p4  ;;  %p1168_p2 = por %p1167_p0, %p1166_p11 }
 0x195   : > { %p1169_p10 = pnand %p1168_p2, %p1162_p8 }
 0x198   : > { %v906_v30 = vpop.f32.mrb[0].mxu0 }
 0x199   : > { %578 = vst.msk [vmem:[%s315_s30 + $0x8] sm:$0xff] %vm576_vm8, %v906_v30  ;;  %v567_v31 = vpop.f32.mrb[1].mxu0 }
 0x19a   : > { %577 = vst.msk [vmem:[%s315_s30] sm:$0xff] %vm576_vm8, %v567_v31 }
 0x19b   : > { %1172 = shalt.err (!%p1169_p10)
}
 0x19c   : > { %s1173_s6 = scalar_lea.hbm %s1631_s13, 256  ;;  %s1177_s28 = scalar_lea.hbm %s1683_s4, 1024 }
 0x19d   : > { %p1174_p13 = scmp.ne.s32.totalorder %s1631_s13, %s1173_s6  ;;  %p1178_p9 = scmp.lt.u32.totalorder %s1631_s13, %s1683_s4 }
 0x19e   : > { %p1179_p12 = scmp.lt.u32.totalorder %s1177_s28, %s1173_s6  ;;  %p1181_p1 = scmp.lt.u32.totalorder %s1173_s6, %s1631_s13 }
 0x19f   : > { %p1175_p3 = pnand %p1174_p13, %p1401_p6 }
 0x1a0   : > { %p1180_p5 = por %p1179_p12, %p1178_p9 }
 0x1a1   : > { %p1176_p7 = pneg %p1175_p3 }
 0x1a2   : > { %p1182_p4 = por %p1181_p1, %p1180_p5 }
 0x1a4   : > { %p1183_p8 = pnand %p1182_p4, %p1176_p7 }
 0x1a6   : > { %1186 = shalt.err (!%p1183_p8)
}
 0x1a7   : > { %946 = dma.vmem_to_hbm [thread:$0]  (%p1401_p6), %s1624_s0, 256, %s1631_s13, %s669_s8, %s1250_s24, %s1250_s24, %s1251_s15  }
 0x1a8 PF: > { %p976_p11 = scmp.ge.s32.totalorder %s1241_s21, 2  ;;  %s718_s12 = sand.u32 1, %s1229_s18  }
 0x1a9   : > { %p1711_p0 = scmp.ne.s32.totalorder %s1694_s25, 0  ;;  %s719_s30 = scalar_lea.sflag [#allocation4], %s718_s12 }
 0x1ab   : > { %p965_p2 = pnand %p976_p11, %p1711_p0 }
 0x1ad   : > { %1220 = dma.done.wait (!%p965_p2), %s719_s30, 256  }
 0x1ae   : > { %1222 = vsyncadd (!%p965_p2), %s719_s30, 4294967040  ;;  %s728_s23 = scalar_lea.sflag [#allocation12], %s718_s12 }
 0x1af   : > { %1224 = dma.done.wait (!%p965_p2), %s728_s23, 256  }
 0x1b0   : > { %1226 = vsyncadd (!%p965_p2), %s728_s23, 4294967040  ;;  %p26_p6 = scmp.ge.s32.totalorder %s1391_s29, 6   ;;  %s1712_s18 = smov %s1233_s19 }
 0x1b1   : > { %s1713_s19 = smov %s1237_s20  ;;  %s1714_s20 = smov %s1407_s27 }
 0x1b2   : > { %s1715_s21 = smov %s1391_s29  ;;  %28 = sbr.rel (!%p26_p6) target bundleno = 14 (0xe), region = 119 }
 0x1b9   :  { %733 = vsyncpa [#allocation3], 1 }
 0x1ba   :  { %735 = vsyncpa [#allocation3 + $0x1], 1 }
 0x1bb   :  { %736 = vsyncpa [#allocation6], 1 }
 0x1bc   :  { %738 = vsyncpa [#allocation6 + $0x1], 1 }
 0x1bd   :  { %739 = vsyncpa [#allocation9], 1 }
 0x1be   :  { %740 = vsyncpa [#allocation4], 1 }
 0x1bf   :  { %742 = vsyncpa [#allocation4 + $0x1], 1 }
 0x1c0   :  { %743 = vsyncpa [#allocation12], 1 }
 0x1c1   :  { %745 = vsyncpa [#allocation12 + $0x1], 1 }

</bundles_post_ra>
